<compile_context>
chip_gen: v7x
topology: tpu7x:2x2x1
jax: 0.10.0
libtpu: 0.0.40
codegen_flags: <defaults>
</compile_context>

<pallas_src>
import functools

import jax
import jax.numpy as jnp
from jax.experimental import pallas as pl
from jax.experimental.pallas import tpu as pltpu


def _vmem_spec():
    return pl.BlockSpec(memory_space=pltpu.MemorySpace.VMEM)


def sgconv_net_kernel(*refs, layers_num, K):
    """Fused forward: layers_num x SGConv(K) -> global_mean_pool -> fc1 -> log_softmax."""
    x_ref, a_ref = refs[0], refs[1]
    layer_refs = refs[2:2 + 2 * layers_num]               # (w0, b0, w1, b1, ...)
    pool_ref, fcw_ref, fcb_ref, out_ref = refs[2 + 2 * layers_num:]

    a = a_ref[...]                                         # [N, N] normalized adjacency (f32)
    h = x_ref[...].astype(jnp.float32)                     # [N, Fin]

    # Static unroll over layers (layers_num = 3) and propagation steps (K = 5).
    for l in range(layers_num):
        w = layer_refs[2 * l][...]                         # [Fin_l, Fout_l]
        b = layer_refs[2 * l + 1][...]                     # [1, Fout_l]
        for _ in range(K):                                 # A_hat^K h  — K MXU matmuls
            h = jnp.dot(a, h, preferred_element_type=jnp.float32)
        h = jnp.dot(h, w, preferred_element_type=jnp.float32) + b

    # global_mean_pool as a matmul with a [G, N] mean-pooling matrix.
    pooled = jnp.dot(pool_ref[...], h, preferred_element_type=jnp.float32)          # [G, C]
    logits = jnp.dot(pooled, fcw_ref[...], preferred_element_type=jnp.float32) + fcb_ref[...]

    # log_softmax(dim=1), numerically stable.
    z = logits - jnp.max(logits, axis=1, keepdims=True)
    lse = jnp.log(jnp.sum(jnp.exp(z), axis=1, keepdims=True))
    out_ref[...] = (z - lse).astype(out_ref.dtype)


def sgconv_net_forward(x, a_hat, layer_params, pool, fc_w, fc_b, *, K):
    layers_num = len(layer_params)
    num_graphs, _ = pool.shape
    out_dim = fc_w.shape[1]

    flat_params = []
    for (w, b) in layer_params:
        flat_params += [w, b]

    kern = functools.partial(sgconv_net_kernel, layers_num=layers_num, K=K)
    n_in = 2 + 2 * layers_num + 3
    return pl.pallas_call(
        kern,
        out_shape=jax.ShapeDtypeStruct((num_graphs, out_dim), jnp.float32),
        in_specs=[_vmem_spec()] * n_in,
        out_specs=_vmem_spec(),
    )(x, a_hat, *flat_params, pool, fc_w, fc_b)


if __name__ == "__main__":
    key = jax.random.PRNGKey(0)

    # --- module hyperparameters (defaults of SGConvNet.__init__) ---
    out_dim = 5
    input_features = 4
    output_channels = 8
    layers_num = 3
    model_dim = 8
    hidden_sf = 5
    out_sf = 4
    K = 5

    hidden_dim = hidden_sf * model_dim          # 40
    out_ch = out_sf * output_channels           # 32

    # --- synthetic graph: 2 graphs of 8 nodes each, bidirectional ring edges ---
    N = 16
    num_graphs = 2
    batch = jnp.array([0] * 8 + [1] * 8, jnp.int32)
    src_list, dst_list = [], []
    for g in range(num_graphs):
        base = g * 8
        for i in range(8):
            j = (i + 1) % 8
            src_list += [base + i, base + j]
            dst_list += [base + j, base + i]
    edge_index = jnp.stack([jnp.array(src_list, jnp.int32),
                            jnp.array(dst_list, jnp.int32)])          # [2, E]

    # gcn_norm, dense: A_hat = D^-1/2 (A + I) D^-1/2 with adj[dst, src].
    adj = jnp.zeros((N, N), jnp.float32).at[edge_index[1], edge_index[0]].set(1.0)
    adj = jnp.maximum(adj, jnp.eye(N, dtype=jnp.float32))             # add self loops
    deg = jnp.sum(adj, axis=1)
    d_inv_sqrt = jnp.where(deg > 0, 1.0 / jnp.sqrt(deg), 0.0)
    a_hat = (d_inv_sqrt[:, None] * adj) * d_inv_sqrt[None, :]         # [N, N]

    # mean-pool matrix [num_graphs, N] (global_mean_pool as a matmul).
    onehot = (batch[None, :] == jnp.arange(num_graphs)[:, None]).astype(jnp.float32)
    pool = onehot / jnp.sum(onehot, axis=1, keepdims=True)

    key, kx = jax.random.split(key)
    x = jax.random.normal(kx, (N, input_features), jnp.float32)

    # layer configuration mirrors the PyTorch __init__ exactly (layers_num = 3)
    layer_cfg = [
        (input_features, hidden_dim),
        (hidden_dim, hidden_dim),
        (hidden_dim, out_ch),
    ]
    assert len(layer_cfg) == layers_num

    layer_params = []
    for fin, fout in layer_cfg:
        key, kw, kb = jax.random.split(key, 3)
        w = 0.1 * jax.random.normal(kw, (fin, fout), jnp.float32)
        b = 0.1 * jax.random.normal(kb, (1, fout), jnp.float32)
        layer_params.append((w, b))

    key, kw, kb = jax.random.split(key, 3)
    fc_w = 0.1 * jax.random.normal(kw, (out_ch, out_dim), jnp.float32)
    fc_b = 0.1 * jax.random.normal(kb, (1, out_dim), jnp.float32)

    # --- fused forward pass (single pallas_call) ---
    out = sgconv_net_forward(x, a_hat, layer_params, pool, fc_w, fc_b, K=K)
    out = jax.block_until_ready(out)

    # sanity: shape, finiteness, and rows are valid log-probabilities (sum(exp) == 1)
    assert out.shape == (num_graphs, out_dim)
    assert bool(jnp.all(jnp.isfinite(out)))
    row_sums = jnp.sum(jnp.exp(out), axis=1)
    assert bool(jnp.all(jnp.abs(row_sums - 1.0) < 1e-4))
    print("KERNEL_OK")
</pallas_src>

<mosaic_0001>
module attributes {stable_mosaic.version = 11 : i64} {
  func.func @sgconv_net_kernel(%arg0: memref<16x4xf32, #tpu.memory_space<vmem>>, %arg1: memref<16x16xf32, #tpu.memory_space<vmem>>, %arg2: memref<4x40xf32, #tpu.memory_space<vmem>>, %arg3: memref<1x40xf32, #tpu.memory_space<vmem>>, %arg4: memref<40x40xf32, #tpu.memory_space<vmem>>, %arg5: memref<1x40xf32, #tpu.memory_space<vmem>>, %arg6: memref<40x32xf32, #tpu.memory_space<vmem>>, %arg7: memref<1x32xf32, #tpu.memory_space<vmem>>, %arg8: memref<2x16xf32, #tpu.memory_space<vmem>>, %arg9: memref<32x5xf32, #tpu.memory_space<vmem>>, %arg10: memref<1x5xf32, #tpu.memory_space<vmem>>, %arg11: memref<2x5xf32, #tpu.memory_space<vmem>>) attributes {dimension_semantics = [], scalar_prefetch = 0 : i64, scratch_operands = 0 : i64, tpu.core_type = #tpu.core_type<tc>} {
    %c0 = arith.constant 0 : index
    %c0_0 = arith.constant 0 : index
    %0 = vector.load %arg1[%c0, %c0_0] : memref<16x16xf32, #tpu.memory_space<vmem>>, vector<16x16xf32>
    %c0_1 = arith.constant 0 : index
    %c0_2 = arith.constant 0 : index
    %1 = vector.load %arg0[%c0_1, %c0_2] : memref<16x4xf32, #tpu.memory_space<vmem>>, vector<16x4xf32>
    %c0_3 = arith.constant 0 : index
    %c0_4 = arith.constant 0 : index
    %2 = vector.load %arg2[%c0_3, %c0_4] : memref<4x40xf32, #tpu.memory_space<vmem>>, vector<4x40xf32>
    %c0_5 = arith.constant 0 : index
    %c0_6 = arith.constant 0 : index
    %3 = vector.load %arg3[%c0_5, %c0_6] : memref<1x40xf32, #tpu.memory_space<vmem>>, vector<1x40xf32>
    %cst = arith.constant dense<0.000000e+00> : vector<16x4xf32>
    %4 = tpu.matmul %0, %1, %cst {dimension_numbers = #tpu.dot_dimension_numbers<[1], [0], [0], [1], [0, 0, 1, 1], [], []>} : vector<16x16xf32>, vector<16x4xf32>, vector<16x4xf32> -> vector<16x4xf32>
    %cst_7 = arith.constant dense<0.000000e+00> : vector<16x4xf32>
    %5 = tpu.matmul %0, %4, %cst_7 {dimension_numbers = #tpu.dot_dimension_numbers<[1], [0], [0], [1], [0, 0, 1, 1], [], []>} : vector<16x16xf32>, vector<16x4xf32>, vector<16x4xf32> -> vector<16x4xf32>
    %cst_8 = arith.constant dense<0.000000e+00> : vector<16x4xf32>
    %6 = tpu.matmul %0, %5, %cst_8 {dimension_numbers = #tpu.dot_dimension_numbers<[1], [0], [0], [1], [0, 0, 1, 1], [], []>} : vector<16x16xf32>, vector<16x4xf32>, vector<16x4xf32> -> vector<16x4xf32>
    %cst_9 = arith.constant dense<0.000000e+00> : vector<16x4xf32>
    %7 = tpu.matmul %0, %6, %cst_9 {dimension_numbers = #tpu.dot_dimension_numbers<[1], [0], [0], [1], [0, 0, 1, 1], [], []>} : vector<16x16xf32>, vector<16x4xf32>, vector<16x4xf32> -> vector<16x4xf32>
    %cst_10 = arith.constant dense<0.000000e+00> : vector<16x4xf32>
    %8 = tpu.matmul %0, %7, %cst_10 {dimension_numbers = #tpu.dot_dimension_numbers<[1], [0], [0], [1], [0, 0, 1, 1], [], []>} : vector<16x16xf32>, vector<16x4xf32>, vector<16x4xf32> -> vector<16x4xf32>
    %cst_11 = arith.constant dense<0.000000e+00> : vector<16x40xf32>
    %9 = tpu.matmul %8, %2, %cst_11 {dimension_numbers = #tpu.dot_dimension_numbers<[1], [0], [0], [1], [0, 0, 1, 1], [], []>} : vector<16x4xf32>, vector<4x40xf32>, vector<16x40xf32> -> vector<16x40xf32>
    %10 = vector.broadcast %3 : vector<1x40xf32> to vector<16x40xf32>
    %11 = arith.addf %9, %10 : vector<16x40xf32>
    %c0_12 = arith.constant 0 : index
    %c0_13 = arith.constant 0 : index
    %12 = vector.load %arg4[%c0_12, %c0_13] : memref<40x40xf32, #tpu.memory_space<vmem>>, vector<40x40xf32>
    %c0_14 = arith.constant 0 : index
    %c0_15 = arith.constant 0 : index
    %13 = vector.load %arg5[%c0_14, %c0_15] : memref<1x40xf32, #tpu.memory_space<vmem>>, vector<1x40xf32>
    %cst_16 = arith.constant dense<0.000000e+00> : vector<16x40xf32>
    %14 = tpu.matmul %0, %11, %cst_16 {dimension_numbers = #tpu.dot_dimension_numbers<[1], [0], [0], [1], [0, 0, 1, 1], [], []>} : vector<16x16xf32>, vector<16x40xf32>, vector<16x40xf32> -> vector<16x40xf32>
    %cst_17 = arith.constant dense<0.000000e+00> : vector<16x40xf32>
    %15 = tpu.matmul %0, %14, %cst_17 {dimension_numbers = #tpu.dot_dimension_numbers<[1], [0], [0], [1], [0, 0, 1, 1], [], []>} : vector<16x16xf32>, vector<16x40xf32>, vector<16x40xf32> -> vector<16x40xf32>
    %cst_18 = arith.constant dense<0.000000e+00> : vector<16x40xf32>
    %16 = tpu.matmul %0, %15, %cst_18 {dimension_numbers = #tpu.dot_dimension_numbers<[1], [0], [0], [1], [0, 0, 1, 1], [], []>} : vector<16x16xf32>, vector<16x40xf32>, vector<16x40xf32> -> vector<16x40xf32>
    %cst_19 = arith.constant dense<0.000000e+00> : vector<16x40xf32>
    %17 = tpu.matmul %0, %16, %cst_19 {dimension_numbers = #tpu.dot_dimension_numbers<[1], [0], [0], [1], [0, 0, 1, 1], [], []>} : vector<16x16xf32>, vector<16x40xf32>, vector<16x40xf32> -> vector<16x40xf32>
    %cst_20 = arith.constant dense<0.000000e+00> : vector<16x40xf32>
    %18 = tpu.matmul %0, %17, %cst_20 {dimension_numbers = #tpu.dot_dimension_numbers<[1], [0], [0], [1], [0, 0, 1, 1], [], []>} : vector<16x16xf32>, vector<16x40xf32>, vector<16x40xf32> -> vector<16x40xf32>
    %cst_21 = arith.constant dense<0.000000e+00> : vector<16x40xf32>
    %19 = tpu.matmul %18, %12, %cst_21 {dimension_numbers = #tpu.dot_dimension_numbers<[1], [0], [0], [1], [0, 0, 1, 1], [], []>} : vector<16x40xf32>, vector<40x40xf32>, vector<16x40xf32> -> vector<16x40xf32>
    %20 = vector.broadcast %13 : vector<1x40xf32> to vector<16x40xf32>
    %21 = arith.addf %19, %20 : vector<16x40xf32>
    %c0_22 = arith.constant 0 : index
    %c0_23 = arith.constant 0 : index
    %22 = vector.load %arg6[%c0_22, %c0_23] : memref<40x32xf32, #tpu.memory_space<vmem>>, vector<40x32xf32>
    %c0_24 = arith.constant 0 : index
    %c0_25 = arith.constant 0 : index
    %23 = vector.load %arg7[%c0_24, %c0_25] : memref<1x32xf32, #tpu.memory_space<vmem>>, vector<1x32xf32>
    %cst_26 = arith.constant dense<0.000000e+00> : vector<16x40xf32>
    %24 = tpu.matmul %0, %21, %cst_26 {dimension_numbers = #tpu.dot_dimension_numbers<[1], [0], [0], [1], [0, 0, 1, 1], [], []>} : vector<16x16xf32>, vector<16x40xf32>, vector<16x40xf32> -> vector<16x40xf32>
    %cst_27 = arith.constant dense<0.000000e+00> : vector<16x40xf32>
    %25 = tpu.matmul %0, %24, %cst_27 {dimension_numbers = #tpu.dot_dimension_numbers<[1], [0], [0], [1], [0, 0, 1, 1], [], []>} : vector<16x16xf32>, vector<16x40xf32>, vector<16x40xf32> -> vector<16x40xf32>
    %cst_28 = arith.constant dense<0.000000e+00> : vector<16x40xf32>
    %26 = tpu.matmul %0, %25, %cst_28 {dimension_numbers = #tpu.dot_dimension_numbers<[1], [0], [0], [1], [0, 0, 1, 1], [], []>} : vector<16x16xf32>, vector<16x40xf32>, vector<16x40xf32> -> vector<16x40xf32>
    %cst_29 = arith.constant dense<0.000000e+00> : vector<16x40xf32>
    %27 = tpu.matmul %0, %26, %cst_29 {dimension_numbers = #tpu.dot_dimension_numbers<[1], [0], [0], [1], [0, 0, 1, 1], [], []>} : vector<16x16xf32>, vector<16x40xf32>, vector<16x40xf32> -> vector<16x40xf32>
    %cst_30 = arith.constant dense<0.000000e+00> : vector<16x40xf32>
    %28 = tpu.matmul %0, %27, %cst_30 {dimension_numbers = #tpu.dot_dimension_numbers<[1], [0], [0], [1], [0, 0, 1, 1], [], []>} : vector<16x16xf32>, vector<16x40xf32>, vector<16x40xf32> -> vector<16x40xf32>
    %cst_31 = arith.constant dense<0.000000e+00> : vector<16x32xf32>
    %29 = tpu.matmul %28, %22, %cst_31 {dimension_numbers = #tpu.dot_dimension_numbers<[1], [0], [0], [1], [0, 0, 1, 1], [], []>} : vector<16x40xf32>, vector<40x32xf32>, vector<16x32xf32> -> vector<16x32xf32>
    %30 = vector.broadcast %23 : vector<1x32xf32> to vector<16x32xf32>
    %31 = arith.addf %29, %30 : vector<16x32xf32>
    %c0_32 = arith.constant 0 : index
    %c0_33 = arith.constant 0 : index
    %32 = vector.load %arg8[%c0_32, %c0_33] : memref<2x16xf32, #tpu.memory_space<vmem>>, vector<2x16xf32>
    %cst_34 = arith.constant dense<0.000000e+00> : vector<2x32xf32>
    %33 = tpu.matmul %32, %31, %cst_34 {dimension_numbers = #tpu.dot_dimension_numbers<[1], [0], [0], [1], [0, 0, 1, 1], [], []>} : vector<2x16xf32>, vector<16x32xf32>, vector<2x32xf32> -> vector<2x32xf32>
    %c0_35 = arith.constant 0 : index
    %c0_36 = arith.constant 0 : index
    %34 = vector.load %arg9[%c0_35, %c0_36] : memref<32x5xf32, #tpu.memory_space<vmem>>, vector<32x5xf32>
    %cst_37 = arith.constant dense<0.000000e+00> : vector<2x5xf32>
    %35 = tpu.matmul %33, %34, %cst_37 {dimension_numbers = #tpu.dot_dimension_numbers<[1], [0], [0], [1], [0, 0, 1, 1], [], []>} : vector<2x32xf32>, vector<32x5xf32>, vector<2x5xf32> -> vector<2x5xf32>
    %c0_38 = arith.constant 0 : index
    %c0_39 = arith.constant 0 : index
    %36 = vector.load %arg10[%c0_38, %c0_39] : memref<1x5xf32, #tpu.memory_space<vmem>>, vector<1x5xf32>
    %37 = vector.broadcast %36 : vector<1x5xf32> to vector<2x5xf32>
    %38 = arith.addf %35, %37 : vector<2x5xf32>
    %cst_40 = arith.constant dense<0xFF800000> : vector<2xf32>
    %39 = vector.multi_reduction <maximumf>, %38, %cst_40 [1] : vector<2x5xf32> to vector<2xf32>
    %40 = vector.shape_cast %39 : vector<2xf32> to vector<2x1xf32>
    %41 = vector.broadcast %40 : vector<2x1xf32> to vector<2x5xf32>
    %42 = arith.subf %38, %41 : vector<2x5xf32>
    %43 = math.exp %42 : vector<2x5xf32>
    %cst_41 = arith.constant dense<0.000000e+00> : vector<2xf32>
    %44 = vector.multi_reduction <add>, %43, %cst_41 [1] : vector<2x5xf32> to vector<2xf32>
    %45 = vector.shape_cast %44 : vector<2xf32> to vector<2x1xf32>
    %46 = math.log %45 : vector<2x1xf32>
    %47 = vector.broadcast %46 : vector<2x1xf32> to vector<2x5xf32>
    %48 = arith.subf %42, %47 : vector<2x5xf32>
    %c0_42 = arith.constant 0 : index
    %c0_43 = arith.constant 0 : index
    %49 = vector.load %arg11[%c0_42, %c0_43] : memref<2x5xf32, #tpu.memory_space<vmem>>, vector<2x5xf32>
    tpu.vector_store %arg11[%c0_42, %c0_43], %48 {strides = array<i32>} : memref<2x5xf32, #tpu.memory_space<vmem>>, vector<2x5xf32>,
    return
  }
}

</mosaic_0001>

<bundles_post_ra>
// kernel: tpu_custom_call.1
= control target key start
LH: loop header
LB: loop body
LE: loop exit
PB: predicated region body
PF: predicated region fallthrough
CT: control target
= control target key end

     0   :  { %vm45_vm0 = vcmask 130048   ;;  %s2264_s0 = inlined_call_operand.vmem [shape: f32[16,4], index: 0, kind: input, shape index: {}]   ;;  %s2265_s1 = inlined_call_operand.vmem [shape: f32[16,16], index: 1, kind: input, shape index: {}]   ;;  %s2266_s2 = inlined_call_operand.vmem [shape: f32[4,40], index: 2, kind: input, shape index: {}]   ;;  %s2267_s3 = inlined_call_operand.vmem [shape: f32[1,40], index: 3, kind: input, shape index: {}]   ;;  %s2268_s4 = inlined_call_operand.vmem [shape: f32[40,40], index: 4, kind: input, shape index: {}]   ;;  %s2269_s5 = inlined_call_operand.vmem [shape: f32[1,40], index: 5, kind: input, shape index: {}]   ;;  %s2270_s6 = inlined_call_operand.vmem [shape: f32[40,32], index: 6, kind: input, shape index: {}]   ;;  %s2271_s7 = inlined_call_operand.vmem [shape: f32[1,32], index: 7, kind: input, shape index: {}]   ;;  %s2272_s8 = inlined_call_operand.vmem [shape: f32[2,16], index: 8, kind: input, shape index: {}]   ;;  %s2273_s9 = inlined_call_operand.vmem [shape: f32[32,5], index: 9, kind: input, shape index: {}]   ;;  %s2274_s10 = inlined_call_operand.vmem [shape: f32[1,5], index: 10, kind: input, shape index: {}]   ;;  %s2275_s11 = inlined_call_operand.hbm [shape: f32[2,5], index: 11, kind: output, shape index: {}]  }
   0x1   :  { %v41_v0 = vld [vmem:[%s2264_s0] sm:$0xff]  ;;  %v42_v1 = vld [vmem:[%s2264_s0 + $0x8] sm:$0xff] }
   0x2   :  { %v2115_v2 = vld [vmem:[%s2265_s1] sm:$0xff]  ;;  %v1925_v3 = vpack.c.bf16 %v42_v1, %v41_v0 }
   0x3   :  { %1775 = vmatprep.mubr.msk.f32.mxu0 %vm45_vm0, %v2115_v2  ;;  %1782 = vmatprep.mubr.msk.f32.mxu1 %vm45_vm0, %v2115_v2 }
   0x4   :  { %16 = vsyncpa [#allocation3], 0  ;;  %1926 = vmatprep.subr.bf16.mxu0 %v1925_v3  ;;  %v2124_v4 = vld [vmem:[%s2265_s1 + $0x8] sm:$0xff]  ;;  %v43_v14 = vld [vmem:[%s2266_s2] sm:$0xf]  ;;  %vm440_vm1 = vcmask 1043456  }
   0x5   :  { %1928 = vmatpush3.bf16.msra.mxu0 %v1925_v3  ;;  %vm433_vm2 = vcmask 31744   ;;  %v1653_v20 = vld [vmem:[%s2267_s3] ss:$0 sm:$0xff]  ;;  %v520_v36 = vld [vmem:[%s2268_s4 + $0x8] sm:$0xff]  ;;  %v521_v37 = vld [vmem:[%s2268_s4 + $0x10] sm:$0xff]  ;;  %vm906_vm3 = vcmask 326656  }
   0x6   :  { %v519_v35 = vld [vmem:[%s2268_s4] sm:$0xff]  ;;  %v522_v39 = vld [vmem:[%s2268_s4 + $0x18] sm:$0xff]  ;;  %v989_v63 = vld [vmem:[%s2270_s6 + $0x8] sm:$0xff]  ;;  %vm2043_vm4 = vmmov 0   ;;  %vm1541_vm5 = vcmask 261120   ;;  %vm1615_vm6 = vcmask 33792  }
   0x7   :  { %v1965_v38 = vpack.c.bf16 %v520_v36, %v519_v35  ;;  %v1969_v40 = vpack.c.bf16 %v522_v39, %v521_v37  ;;  %v523_v44 = vld [vmem:[%s2268_s4 + $0x20] sm:$0xff]  ;;  %v990_v0 = vld [vmem:[%s2270_s6 + $0x10] sm:$0xff] }
   0x8   :  { %1776 = vmatmul.mubr.msk.f32.vlgmr.msra.gmra.mrb[0].mxu0 %vm45_vm0, %v2124_v4  ;;  %v1667_v47 = vld [vmem:[%s2269_s5] ss:$0 sm:$0xff] }
   0x9   :  { %1789 = vmatprep.mubr.msk.f32.mxu0 %vm45_vm0, %v2115_v2  ;;  %v988_v62 = vld [vmem:[%s2270_s6] sm:$0xff] }
   0xa   :  { %v1993_v1 = vpack.c.bf16 %v989_v63, %v988_v62 }
  0xdb   :  { %v1777_v5 = vpop.f32.mrb[0].mxu0 }
  0xdc   :  { %v118_v6 = vpop.f32.mrb[1].mxu0 }
  0xdd   :  { %v1929_v7 = vpack.c.bf16 %v1777_v5, %v118_v6 }
  0xdf   :  { %1930 = vmatprep.subr.bf16.mxu1 %v1929_v7 }
  0xe0   :  { %1932 = vmatpush3.bf16.msra.mxu1 %v1929_v7 }
  0xe3   :  { %1783 = vmatmul.mubr.msk.f32.vlgmr.msra.gmra.mrb[0].mxu1 %vm45_vm0, %v2124_v4 }
  0xe4   :  { %1796 = vmatprep.mubr.msk.f32.mxu1 %vm45_vm0, %v2115_v2 }
 0x1b6   :  { %v1784_v8 = vpop.f32.mrb[0].mxu1 }
 0x1b7   :  { %v193_v9 = vpop.f32.mrb[1].mxu1 }
 0x1b8   :  { %v1933_v10 = vpack.c.bf16 %v1784_v8, %v193_v9  ;;  %v992_v8 = vld [vmem:[%s2270_s6 + $0x20] sm:$0xff] }
 0x1ba   :  { %1934 = vmatprep.subr.bf16.mxu0 %v1933_v10 }
 0x1bb   :  { %1936 = vmatpush3.bf16.msra.mxu0 %v1933_v10 }
 0x1be   :  { %1790 = vmatmul.mubr.msk.f32.vlgmr.msra.gmra.mrb[2].mxu0 %vm45_vm0, %v2124_v4 }
 0x1bf   :  { %1803 = vmatprep.mubr.msk.f32.mxu0 %vm45_vm0, %v2115_v2 }
 0x291   :  { %v1791_v11 = vpop.f32.mrb[2].mxu0 }
 0x292   :  { %v268_v12 = vpop.f32.mrb[3].mxu0 }
 0x293   :  { %v1937_v13 = vpack.c.bf16 %v1791_v11, %v268_v12  ;;  %v2042_v11 = vmov 0.0|0.0   ;;  %v2044_v12 = vmov 0.0  }
 0x295   :  { %1938 = vmatprep.subr.bf16.mxu1 %v1937_v13 }
 0x296   :  { %1940 = vmatpush3.bf16.msra.mxu1 %v1937_v13 }
 0x297   :  { %1806 = vmatprep.subr.msk.mxu1 %vm440_vm1, %v43_v14 }
 0x299   :  { %1797 = vmatmul.mubr.msk.f32.vlgmr.msra.gmra.mrb[2].mxu1 %vm45_vm0, %v2124_v4 }
 0x29a   :  { %1807 = vmatpush3.msk.msra.mxu1 %vm440_vm1, %v43_v14 }
 0x36c   :  { %v1798_v15 = vpop.f32.mrb[2].mxu1 }
 0x36d   :  { %v343_v16 = vpop.f32.mrb[3].mxu1 }
 0x36e   :  { %v1941_v17 = vpack.c.bf16 %v1798_v15, %v343_v16 }
 0x370   :  { %1942 = vmatprep.subr.bf16.mxu0 %v1941_v17 }
 0x371   :  { %1944 = vmatpush3.bf16.msra.mxu0 %v1941_v17  ;;  %v1530_v17 = vld [vmem:[%s2273_s9] sm:$0xff] }
 0x374   :  { %1804 = vmatmul.mubr.msk.f32.vlgmr.msra.gmra.mrb[4].mxu0 %vm45_vm0, %v2124_v4 }
 0x375   :  { %1815 = vmatprep.mubr.msk.f32.mxu0 %vm45_vm0, %v2115_v2 }
 0x447   :  { %v1805_v18 = vpop.f32.mrb[4].mxu0 }
 0x448   :  { %v418_v19 = vpop.f32.mrb[5].mxu0 }
 0x449   :  { %1808 = vmatprep.mubr.msk.f32.mxu1 %vm433_vm2, %v418_v19 }
 0x44a   :  { %1809 = vmatmul.mubr.msk.f32.vlgmr.msra.gmra.mrb[4].mxu1 %vm433_vm2, %v1805_v18  ;;  %v1531_v18 = vld [vmem:[%s2273_s9 + $0x8] sm:$0xff] }
 0x44b   :  { %1822 = vmatprep.mubr.msk.f32.mxu1 %vm45_vm0, %v2115_v2 }
 0x51d   :  { %v1810_v21 = vpop.f32.mrb[4].mxu1 }
 0x51e   :  { %v516_v22 = vadd.f32 %v1810_v21, %v1653_v20  ;;  %v510_v23 = vpop.f32.mrb[5].mxu1  ;;  %v2005_v21 = vpack.c.bf16 %v1531_v18, %v1530_v17 }
 0x51f   :  { %v511_v24 = vadd.f32 %v1653_v20, %v510_v23  ;;  %v1456_v20 = vld [vmem:[%s2272_s8] sm:$0x3]  ;;  %v1533_v23 = vld [vmem:[%s2273_s9 + $0x18] sm:$0xff] }
 0x521   :  { %v1945_v25 = vpack.c.bf16 %v516_v22, %v511_v24  ;;  %v1532_v22 = vld [vmem:[%s2273_s9 + $0x10] sm:$0xff]  ;;  %s2045_s9 = smov [#allocation2]  }
 0x522   :  { %v2008_v24 = vpack.c.bf16 %v1533_v23, %v1532_v22 }
 0x523   :  { %1946 = vmatprep.subr.bf16.mxu0 %v1945_v25 }
 0x524   :  { %1948 = vmatpush3.bf16.msra.mxu0 %v1945_v25 }
 0x527   :  { %1816 = vmatmul.mubr.msk.f32.vlgmr.msra.gmra.mrb[6].mxu0 %vm45_vm0, %v2124_v4 }
 0x528   :  { %1829 = vmatprep.mubr.msk.f32.mxu0 %vm45_vm0, %v2115_v2 }
 0x5fa   :  { %v1817_v26 = vpop.f32.mrb[6].mxu0 }
 0x5fb   :  { %v591_v27 = vpop.f32.mrb[7].mxu0 }
 0x5fc   :  { %v1949_v28 = vpack.c.bf16 %v1817_v26, %v591_v27  ;;  %v1684_v27 = vld [vmem:[%s2274_s10] ss:$0 sm:$0xff]  ;;  %s1635_s10 = sshll.u32 %s2045_s9, 4  ;;  %s1636_s10 = int_to_ptr.vmem [resolvable:$true] %s1635_s10 }
 0x5fd   :  { %s2018_s14 = scalar_lea.vmem %s1636_s10, 32  ;;  %p2023_p1 = scmp.lt.s32.totalorder %s1636_s10, %s1636_s10 }
 0x5fe   :  { %1950 = vmatprep.subr.bf16.mxu1 %v1949_v28  ;;  %p2019_p0 = scmp.ne.s32.totalorder %s1636_s10, %s2018_s14  ;;  %p2024_p2 = scmp.lt.s32.totalorder %s2018_s14, %s2018_s14 }
 0x5ff   :  { %1952 = vmatpush3.bf16.msra.mxu1 %v1949_v28 }
 0x600   :  { %p2025_p3 = por %p2024_p2, %p2023_p1 }
 0x602   :  { %1823 = vmatmul.mubr.msk.f32.vlgmr.msra.gmra.mrb[6].mxu1 %vm45_vm0, %v2124_v4  ;;  %p2026_p4 = pnand %p2025_p3, %p2019_p0 }
 0x603   :  { %1836 = vmatprep.mubr.msk.f32.mxu1 %vm45_vm0, %v2115_v2 }
 0x6d5   :  { %v1824_v29 = vpop.f32.mrb[6].mxu1 }
 0x6d6   :  { %v666_v30 = vpop.f32.mrb[7].mxu1 }
 0x6d7   :  { %v1953_v31 = vpack.c.bf16 %v1824_v29, %v666_v30 }
 0x6d9   :  { %1954 = vmatprep.subr.bf16.mxu0 %v1953_v31 }
 0x6da   :  { %1956 = vmatpush3.bf16.msra.mxu0 %v1953_v31 }
 0x6dd   :  { %1830 = vmatmul.mubr.msk.f32.vlgmr.msra.gmra.mrb[8].mxu0 %vm45_vm0, %v2124_v4 }
 0x6de   :  { %1843 = vmatprep.mubr.msk.f32.mxu0 %vm45_vm0, %v2115_v2 }
 0x7b0   :  { %v1831_v32 = vpop.f32.mrb[8].mxu0 }
 0x7b1   :  { %v741_v33 = vpop.f32.mrb[9].mxu0 }
 0x7b2   :  { %v1957_v34 = vpack.c.bf16 %v1831_v32, %v741_v33 }
 0x7b4   :  { %1958 = vmatprep.subr.bf16.mxu1 %v1957_v34 }
 0x7b5   :  { %1960 = vmatpush3.bf16.msra.mxu1 %v1957_v34 }
 0x7b6   :  { %1966 = vmatprep.subr.bf16.mxu1 %v1965_v38 }
 0x7b8   :  { %1837 = vmatmul.mubr.msk.f32.vlgmr.msra.gmra.mrb[8].mxu1 %vm45_vm0, %v2124_v4 }
 0x7b9   :  { %1968 = vmatpush3.bf16.msra.mxu1 %v1965_v38 }
 0x7ba   :  { %1970 = vmatprep.subr.bf16.mxu1 %v1969_v40 }
 0x7bd   :  { %1972 = vmatpush3.bf16.msra.mxu1 %v1969_v40 }
 0x7be   :  { %1854 = vmatprep.subr.mxu1 %v523_v44 }
 0x7c1   :  { %1855 = vmatpush3.msra.mxu1 %v523_v44 }
 0x88b   :  { %v1838_v41 = vpop.f32.mrb[8].mxu1 }
 0x88c   :  { %v816_v42 = vpop.f32.mrb[9].mxu1 }
 0x88d   :  { %v1961_v43 = vpack.c.bf16 %v1838_v41, %v816_v42 }
 0x88f   :  { %1962 = vmatprep.subr.bf16.mxu0 %v1961_v43 }
 0x890   :  { %1964 = vmatpush3.bf16.msra.mxu0 %v1961_v43 }
 0x893   :  { %1844 = vmatmul.mubr.msk.f32.vlgmr.msra.gmra.mrb[10].mxu0 %vm45_vm0, %v2124_v4 }
 0x894   :  { %1863 = vmatprep.mubr.msk.f32.mxu0 %vm45_vm0, %v2115_v2 }
 0x966   :  { %v1845_v45 = vpop.f32.mrb[10].mxu0 }
 0x967   :  { %v891_v46 = vpop.f32.mrb[11].mxu0 }
 0x968   :  { %1856 = vmatprep.mubr.msk.f32.mxu1 %vm906_vm3, %v891_v46 }
 0x969   :  { %1857 = vmatmul.mubr.msk.f32.vlgmr.msra.gmra.mrb[10].mxu1 %vm906_vm3, %v1845_v45 }
 0x96a   :  { %1877 = vmatprep.mubr.msk.f32.mxu1 %vm45_vm0, %v2115_v2 }
 0xa3c   :  { %v1858_v48 = vpop.f32.mrb[10].mxu1 }
 0xa3d   :  { %v985_v49 = vadd.f32 %v1858_v48, %v1667_v47  ;;  %v979_v50 = vpop.f32.mrb[11].mxu1 }
 0xa3e   :  { %v980_v51 = vadd.f32 %v1667_v47, %v979_v50 }
 0xa40   :  { %v1973_v52 = vpack.c.bf16 %v985_v49, %v980_v51 }
 0xa42   :  { %1974 = vmatprep.subr.bf16.mxu0 %v1973_v52 }
 0xa43   :  { %1976 = vmatpush3.bf16.msra.mxu0 %v1973_v52 }
 0xa46   :  { %1864 = vmatmul.mubr.msk.f32.vlgmr.msra.gmra.mrb[12].mxu0 %vm45_vm0, %v2124_v4 }
 0xa47   :  { %1870 = vmatprep.mubr.msk.f32.mxu0 %vm45_vm0, %v2115_v2 }
 0xb19   :  { %v1865_v53 = vpop.f32.mrb[12].mxu0 }
 0xb1a   :  { %v1060_v54 = vpop.f32.mrb[13].mxu0 }
 0xb1b   :  { %v1977_v55 = vpack.c.bf16 %v1865_v53, %v1060_v54 }
 0xb1d   :  { %1978 = vmatprep.subr.bf16.mxu0 %v1977_v55 }
 0xb1e   :  { %1980 = vmatpush3.bf16.msra.mxu0 %v1977_v55 }
 0xb21   :  { %1871 = vmatmul.mubr.msk.f32.vlgmr.msra.gmra.mrb[14].mxu0 %vm45_vm0, %v2124_v4 }
 0xb22   :  { %1884 = vmatprep.mubr.msk.f32.mxu0 %vm45_vm0, %v2115_v2 }
 0xbf4   :  { %v1872_v56 = vpop.f32.mrb[14].mxu0 }
 0xbf5   :  { %v1135_v57 = vpop.f32.mrb[15].mxu0 }
 0xbf6   :  { %v1981_v58 = vpack.c.bf16 %v1872_v56, %v1135_v57 }
 0xbf8   :  { %1982 = vmatprep.subr.bf16.mxu1 %v1981_v58 }
 0xbf9   :  { %1984 = vmatpush3.bf16.msra.mxu1 %v1981_v58 }
 0xbfc   :  { %1878 = vmatmul.mubr.msk.f32.vlgmr.msra.gmra.mrb[12].mxu1 %vm45_vm0, %v2124_v4 }
 0xbfd   :  { %1891 = vmatprep.mubr.msk.f32.mxu1 %vm45_vm0, %v2115_v2  ;;  %v991_v2 = vld [vmem:[%s2270_s6 + $0x18] sm:$0xff] }
 0xbfe   :  { %v1997_v3 = vpack.c.bf16 %v991_v2, %v990_v0 }
 0xccf   :  { %v1879_v59 = vpop.f32.mrb[12].mxu1 }
 0xcd0   :  { %v1210_v60 = vpop.f32.mrb[13].mxu1 }
 0xcd1   :  { %v1985_v61 = vpack.c.bf16 %v1879_v59, %v1210_v60 }
 0xcd3   :  { %1986 = vmatprep.subr.bf16.mxu0 %v1985_v61 }
 0xcd4   :  { %1988 = vmatpush3.bf16.msra.mxu0 %v1985_v61 }
 0xcd5   :  { %1994 = vmatprep.subr.bf16.mxu0 %v1993_v1 }
 0xcd7   :  { %1885 = vmatmul.mubr.msk.f32.vlgmr.msra.gmra.mrb[16].mxu0 %vm45_vm0, %v2124_v4 }
 0xcd8   :  { %1996 = vmatpush3.bf16.msra.mxu0 %v1993_v1 }
 0xcd9   :  { %1998 = vmatprep.subr.bf16.mxu0 %v1997_v3 }
 0xcdc   :  { %2000 = vmatpush3.bf16.msra.mxu0 %v1997_v3 }
 0xcdd   :  { %1902 = vmatprep.subr.mxu0 %v992_v8 }
 0xce0   :  { %1903 = vmatpush3.msra.mxu0 %v992_v8 }
 0xdaa   :  { %v1886_v5 = vpop.f32.mrb[16].mxu0 }
 0xdab   :  { %v1285_v6 = vpop.f32.mrb[17].mxu0 }
 0xdac   :  { %v1989_v7 = vpack.c.bf16 %v1886_v5, %v1285_v6 }
 0xdae   :  { %1990 = vmatprep.subr.bf16.mxu1 %v1989_v7 }
 0xdaf   :  { %1992 = vmatpush3.bf16.msra.mxu1 %v1989_v7 }
 0xdb0   :  { %2001 = vmatprep.subr.bf16.mxu1 %v2042_v11 }
 0xdb2   :  { %1892 = vmatmul.mubr.msk.f32.vlgmr.msra.gmra.mrb[14].mxu1 %vm45_vm0, %v2124_v4  ;;  %v1680_v4 = vld [vmem:[%s2271_s7] ss:$0 sm:$0xff] }
 0xdb3   :  { %1911 = vmatprep.mubr.msk.f32.mxu1 %vm2043_vm4, %v2044_v12 }
 0xe85   :  { %v1893_v9 = vpop.f32.mrb[14].mxu1 }
 0xe86   :  { %v1360_v10 = vpop.f32.mrb[15].mxu1 }
 0xe87   :  { %1904 = vmatprep.mubr.msk.f32.mxu0 %vm906_vm3, %v1360_v10 }
 0xe88   :  { %1905 = vmatmul.mubr.msk.f32.vlgmr.msra.gmra.mrb[18].mxu0 %vm906_vm3, %v1893_v9 }
 0xf5b   :  { %v1906_v13 = vpop.f32.mrb[18].mxu0 }
 0xf5c   :  { %v1453_v14 = vadd.f32 %v1906_v13, %v1680_v4  ;;  %v1447_v15 = vpop.f32.mrb[19].mxu0 }
 0xf5d   :  { %v1448_v16 = vadd.f32 %v1680_v4, %v1447_v15 }
 0xf5f   :  { %v2002_v19 = vpack.c.bf16 %v1453_v14, %v1448_v16 }
 0xf61   :  { %2003 = vmatpush3.bf16.msra.mxu1 %v2002_v19 }
 0xf62   :  { %2004 = vmatprep.subr.bf16.mxu1 %v2042_v11 }
 0xf64   :  { %1912 = vmatmul.mubr.msk.f32.vlgmr.msra.gmra.mrb[16].mxu1 %vm45_vm0, %v1456_v20 }
 0xf65   :  { %2006 = vmatpush3.bf16.msra.mxu1 %v2005_v21  ;;  %1922 = vmatprep.mubr.msk.f32.mxu1 %vm2043_vm4, %v2044_v12 }
 0xf66   :  { %2007 = vmatprep.subr.bf16.mxu1 %v2042_v11 }
 0xf69   :  { %2009 = vmatpush3.bf16.msra.mxu1 %v2008_v24 }
0x1037   :  { %v1526_v25 = vpop.f32.mrb[16].mxu1 }
0x1038   :  { %v1913_v26 = vpop.f32.mrb[17].mxu1  ;;  %1923 = vmatmul.mubr.msk.f32.vlgmr.msra.gmra.mrb[18].mxu1 %vm1541_vm5, %v1526_v25 }
0x110b   :  { %v1611_v28 = vpop.f32.mrb[18].mxu1 }
0x110c   :  { %v1612_v29 = vadd.f32 %v1684_v27, %v1611_v28  ;;  %v1924_v30 = vpop.f32.mrb[19].mxu1 }
0x110e   :  { %v1616_v31 = vsel %vm1615_vm6, %v1612_v29, -inf }
0x110f   :  { %1617 = vmax.xlane.f32.xlu0 %v1616_v31 }
0x119c   :  { %v1618_v32 = vpop.xlane.xlu0 %1617 }
0x119d   :  { %v1619_v33 = vsub.f32 %v1612_v29, %v1618_v32 }
0x119f   :  { %v1620_v34 = vmul.f32 1.442695, %v1619_v33 }
0x11a1   :  { %2014 = vpow2.f32 %v1620_v34 }
0x11ab   :  { %v2015_v35 = vpop.eup %2014 }
0x11ac   :  { %v1622_v36 = vsel %vm1615_vm6, %v2015_v35, 0.0 }
0x11ad   :  { %1623 = vadd.xlane.f32.xlu0 %v1622_v36 }
0x123a   :  { %v1624_v37 = vpop.xlane.xlu0 %1623 }
0x123b   :  { %2016 = vlog2.f32 %v1624_v37 }
0x1245   :  { %v2017_v38 = vpop.eup %2016 }
0x1246   :  { %v1626_v39 = vmul.f32 0.6931472, %v2017_v38 }
0x1248   :  { %v1627_v40 = vsub.f32 %v1619_v33, %v1626_v39 }
0x124a   :  { %1628 = vst.msk [vmem:[#allocation2] sm:$0x3] %vm1615_vm6, %v1627_v40 }
0x124b   :  { %2029 = shalt.err (!%p2026_p4)
}
0x124c   :  { %s2030_s17 = scalar_lea.hbm %s2275_s11, 32 }
0x124d   :  { %p2031_p5 = scmp.ne.s32.totalorder %s2275_s11, %s2030_s17  ;;  %p2034_p6 = scmp.lt.u32.totalorder %s2030_s17, %s2275_s11 }
0x124f   :  { %p2036_p7 = pnand %p2034_p6, %p2031_p5 }
0x1251   :  { %2039 = shalt.err (!%p2036_p7)
}
0x1252   :  { %1638 = dma.vmem_to_hbm [thread:$0]  %s1636_s10, 32, %s2275_s11, [#allocation3]  }
0x1253   :  { %2040 = dma.done.wait [#allocation3], 32  }
0x1254   :  { %2041 = vsyncadd [#allocation3], 4294967264 }
0x1255   :  { %1642 = vsyncpa [#allocation3], 1 }

</bundles_post_ra>
